<compile_context>
chip_gen: v7x
topology: tpu7x:2x2x1
jax: 0.10.0
libtpu: 0.0.40
codegen_flags: <defaults>
</compile_context>

<pallas_src>
import functools
import math

import jax
import jax.numpy as jnp
from jax import lax
from jax.experimental import pallas as pl
from jax.experimental.pallas import tpu as pltpu


def _dice_sums_kernel(out_ref, tgt_ref, inter_ref, osum_ref, tsum_ref, *,
                      hw, s_tile, num_classes, logits_to_probabilities,
                      targets_are_labels, needs_mask):
    """One (batch, spatial-tile) grid step.

    out_ref: (C, S, 128) logits tile.
    tgt_ref: (C, S, 128) dense float targets  OR  (S, 128) int32 labels.
    inter/osum/tsum_ref: (C, 128) lane-dense running sums, resident across the
    spatial ("arbitrary") grid axis for this batch element.
    """
    k = pl.program_id(1)

    # Zero the per-batch accumulators on the first spatial step.
    @pl.when(k == 0)
    def _():
        inter_ref[...] = jnp.zeros_like(inter_ref)
        osum_ref[...] = jnp.zeros_like(osum_ref)
        tsum_ref[...] = jnp.zeros_like(tsum_ref)

    x = out_ref[...].astype(jnp.float32)                      # (C, S, 128)

    if targets_are_labels:
        lbl = tgt_ref[...]                                    # (S, 128) int32
        cls = lax.broadcasted_iota(jnp.int32, (num_classes, s_tile, 128), 0)
        t = (lbl[None, :, :] == cls).astype(jnp.float32)      # in-kernel one-hot
    else:
        t = tgt_ref[...].astype(jnp.float32)                  # (C, S, 128)

    if logits_to_probabilities:
        if num_classes == 1:
            p = jax.nn.sigmoid(x)
        else:
            # Channel softmax: max/sum across the C planes are VPU work,
            # exp / reciprocal go to the EUP slot.
            m = jnp.max(x, axis=0, keepdims=True)             # (1, S, 128)
            e = jnp.exp(x - m)
            denom = jnp.sum(e, axis=0, keepdims=True)         # (1, S, 128)
            p = e * pl.reciprocal(denom, approx=True)
    else:
        p = x

    def _accumulate(p_, t_):
        # Reduce over the spatial/sublane axis only -> lane-resident (C, 128)
        # partials (VPU vreg adds). The cross-lane reduce happens exactly once,
        # in the JAX epilogue.
        inter_ref[...] += jnp.sum(p_ * t_, axis=1)
        osum_ref[...] += jnp.sum(p_, axis=1)
        tsum_ref[...] += jnp.sum(t_, axis=1)

    if needs_mask:
        # All padded elements live in the last spatial tile -> gate the mask.
        is_last = k == pl.num_programs(1) - 1

        @pl.when(is_last)
        def _():
            rows_i = lax.broadcasted_iota(jnp.int32, (s_tile, 128), 0)
            cols_i = lax.broadcasted_iota(jnp.int32, (s_tile, 128), 1)
            gidx = (k * s_tile + rows_i) * 128 + cols_i
            valid = (gidx < hw)[None, :, :]
            _accumulate(jnp.where(valid, p, 0.0), jnp.where(valid, t, 0.0))

        @pl.when(k != pl.num_programs(1) - 1)
        def _():
            _accumulate(p, t)
    else:
        _accumulate(p, t)


def dice_loss_pallas(outputs, targets, class_weights,
                     logits_to_probabilities=True, smooth=1e-5,
                     storage_dtype=None, max_rows_per_tile=None):
    """Dice loss forward (matches the PyTorch DiceLoss module).

    outputs: (N, C, *spatial) logits (or probabilities).
    targets: (N, C, *spatial) dense float masks  OR  (N, *spatial) int labels.
    class_weights: length-C weights (normalized to sum to 1).
    storage_dtype: optional dtype (e.g. jnp.bfloat16) the streamed tensors are
        cast to before the kernel; compute stays in f32.
    max_rows_per_tile: optional cap on the spatial tile (testing / tuning).
    """
    outputs = jnp.asarray(outputs)
    targets = jnp.asarray(targets)
    N, C = outputs.shape[0], outputs.shape[1]
    hw = math.prod(outputs.shape[2:])

    targets_are_labels = (targets.ndim == outputs.ndim - 1
                          and jnp.issubdtype(targets.dtype, jnp.integer))

    out_store_dtype = jax.dtypes.canonicalize_dtype(
        storage_dtype if storage_dtype is not None else outputs.dtype)
    if targets_are_labels:
        tgt_store_dtype = jax.dtypes.canonicalize_dtype(jnp.int32)
    else:
        tgt_store_dtype = jax.dtypes.canonicalize_dtype(
            storage_dtype if storage_dtype is not None else targets.dtype)

    # ---- spatial tiling: 128 lanes x S_TILE sublane rows, VMEM-budgeted ----
    rows = -(-hw // 128)                       # ceil(HW / 128)
    # Per-row VMEM use: 2 double-buffered input streams + ~4 block-sized f32
    # temporaries (upcast, exp/p, p*t, one-hot). 24 MiB budget + 48 MiB limit
    # keeps the footprint under v7x's 64 MiB/TensorCore VMEM.
    vmem_budget = 24 * 1024 * 1024
    row_bytes = 2 * C * 128 * out_store_dtype.itemsize
    if targets_are_labels:
        row_bytes += 2 * 128 * 4                               # int32 labels
    else:
        row_bytes += 2 * C * 128 * tgt_store_dtype.itemsize
    row_bytes += 4 * C * 128 * 4                               # f32 temporaries
    rows_budget = max(8, min(4096, (vmem_budget // row_bytes) // 8 * 8))
    if max_rows_per_tile is not None:
        rows_budget = max(8, min(rows_budget, (max_rows_per_tile // 8) * 8))

    if rows <= rows_budget:
        s_tile = rows                          # full extent (no 8-div needed)
        n_tiles = 1
    else:
        s_tile = rows_budget                   # multiple of 8
        n_tiles = -(-rows // s_tile)
    rows_pad = n_tiles * s_tile
    hw_pad = rows_pad * 128
    needs_mask = hw_pad != hw

    # ---- host-side layout: (N, C, rows_pad, 128) keeps vregs sublane-dense
    # even for small C; reshape is free when HW % 128 == 0 (typical shapes).
    out_p = outputs.reshape(N, C, hw).astype(out_store_dtype)
    if hw_pad != hw:
        out_p = jnp.pad(out_p, ((0, 0), (0, 0), (0, hw_pad - hw)))
    out_p = out_p.reshape(N, C, rows_pad, 128)

    if targets_are_labels:
        tgt_p = targets.reshape(N, hw).astype(jnp.int32)
        if hw_pad != hw:
            # Pad with C so no class matches (also masked on the last tile).
            tgt_p = jnp.pad(tgt_p, ((0, 0), (0, hw_pad - hw)),
                            constant_values=C)
        tgt_p = tgt_p.reshape(N, rows_pad, 128)
        tgt_spec = pl.BlockSpec((None, s_tile, 128), lambda n, k: (n, k, 0))
    else:
        tgt_p = targets.reshape(N, C, hw).astype(tgt_store_dtype)
        if hw_pad != hw:
            tgt_p = jnp.pad(tgt_p, ((0, 0), (0, 0), (0, hw_pad - hw)))
        tgt_p = tgt_p.reshape(N, C, rows_pad, 128)
        tgt_spec = pl.BlockSpec((None, C, s_tile, 128),
                                lambda n, k: (n, 0, k, 0))

    kernel = functools.partial(
        _dice_sums_kernel,
        hw=hw, s_tile=s_tile, num_classes=C,
        logits_to_probabilities=logits_to_probabilities,
        targets_are_labels=targets_are_labels,
        needs_mask=needs_mask)

    sum_shape = jax.ShapeDtypeStruct((N, C, 128), jnp.float32)
    out_block = pl.BlockSpec((None, C, 128), lambda n, k: (n, 0, 0))

    inter, osum, tsum = pl.pallas_call(
        kernel,
        out_shape=(sum_shape, sum_shape, sum_shape),
        grid_spec=pltpu.PrefetchScalarGridSpec(
            num_scalar_prefetch=0,
            grid=(N, n_tiles),
            in_specs=[
                pl.BlockSpec((None, C, s_tile, 128),
                             lambda n, k: (n, 0, k, 0)),      # logits
                tgt_spec,                                     # targets / labels
            ],
            out_specs=(out_block, out_block, out_block),
        ),
        compiler_params=pltpu.CompilerParams(
            dimension_semantics=("parallel", "arbitrary"),
            vmem_limit_bytes=48 * 1024 * 1024,
        ),
    )(out_p, tgt_p)

    # ---- tiny JAX epilogue: single cross-lane reduce, dice, weights, mean ----
    inter = jnp.sum(inter, axis=-1)                           # (N, C)
    osum = jnp.sum(osum, axis=-1)
    tsum = jnp.sum(tsum, axis=-1)
    cw = jnp.asarray(class_weights, dtype=jnp.float32)
    cw = (cw / jnp.sum(cw))[None, :]                          # (1, C)
    dice = (2.0 * inter + smooth) / (osum + tsum + smooth)    # (N, C)
    return jnp.sum((1.0 - dice) * cw) / N


def dice_loss_reference(outputs, targets, class_weights,
                        logits_to_probabilities=True, smooth=1e-5):
    """Plain-JAX reference mirroring the PyTorch module exactly."""
    cw = jnp.asarray(class_weights, dtype=jnp.float32)
    cw = (cw / jnp.sum(cw))[None, :]
    if logits_to_probabilities:
        if cw.shape[1] == 1:
            outputs = jax.nn.sigmoid(outputs)
        else:
            outputs = jax.nn.softmax(outputs, axis=1)
    sum_dims = tuple(range(2, outputs.ndim))
    intersection = jnp.sum(outputs * targets, axis=sum_dims)
    out_sum = jnp.sum(outputs, axis=sum_dims)
    tgt_sum = jnp.sum(targets, axis=sum_dims)
    dice = (2.0 * intersection + smooth) / (out_sum + tgt_sum + smooth)
    loss = jnp.sum((1.0 - dice) * cw)
    return loss / out_sum.shape[0]


if __name__ == "__main__":
    key = jax.random.PRNGKey(0)
    keys = jax.random.split(key, 8)

    # 1) Primary: batch=2, channels=4, 16x16, dense one-hot targets, softmax.
    N, C, H, W = 2, 4, 16, 16
    cw = [1.0, 2.0, 3.0, 4.0]
    logits = jax.random.normal(keys[0], (N, C, H, W), dtype=jnp.float32)
    labels = jax.random.randint(keys[1], (N, H, W), 0, C)
    onehot = jnp.transpose(jax.nn.one_hot(labels, C, dtype=jnp.float32),
                           (0, 3, 1, 2))                      # (N, C, H, W)
    ref = dice_loss_reference(logits, onehot, cw)

    loss_dense = jax.block_until_ready(dice_loss_pallas(logits, onehot, cw))
    assert jnp.allclose(loss_dense, ref, rtol=2e-3, atol=1e-5), (loss_dense, ref)

    # 2) Integer-label path (in-kernel one-hot) must match the dense path.
    loss_lbl = jax.block_until_ready(dice_loss_pallas(logits, labels, cw))
    assert jnp.allclose(loss_lbl, ref, rtol=2e-3, atol=1e-5), (loss_lbl, ref)

    # 3) bf16 storage path (reference computed on bf16-quantized logits).
    ref_q = dice_loss_reference(
        logits.astype(jnp.bfloat16).astype(jnp.float32), onehot, cw)
    loss_bf16 = jax.block_until_ready(
        dice_loss_pallas(logits, labels, cw, storage_dtype=jnp.bfloat16))
    assert jnp.allclose(loss_bf16, ref_q, rtol=2e-3, atol=1e-5), (loss_bf16, ref_q)

    # 4) Multi-tile accumulation + ragged-tail mask (forced small tiles).
    N2, C2, H2, W2 = 2, 3, 40, 40
    cw2 = [0.2, 0.3, 0.5]
    logits2 = jax.random.normal(keys[2], (N2, C2, H2, W2), dtype=jnp.float32)
    labels2 = jax.random.randint(keys[3], (N2, H2, W2), 0, C2)
    onehot2 = jnp.transpose(jax.nn.one_hot(labels2, C2, dtype=jnp.float32),
                            (0, 3, 1, 2))
    ref2 = dice_loss_reference(logits2, onehot2, cw2)
    loss2_dense = jax.block_until_ready(
        dice_loss_pallas(logits2, onehot2, cw2, max_rows_per_tile=8))
    loss2_lbl = jax.block_until_ready(
        dice_loss_pallas(logits2, labels2, cw2, max_rows_per_tile=8))
    assert jnp.allclose(loss2_dense, ref2, rtol=2e-3, atol=1e-5), (loss2_dense, ref2)
    assert jnp.allclose(loss2_lbl, ref2, rtol=2e-3, atol=1e-5), (loss2_lbl, ref2)

    # 5) Single-channel sigmoid path (HW < 128 exercises the lane mask).
    logits3 = jax.random.normal(keys[4], (2, 1, 8, 8), dtype=jnp.float32)
    tgt3 = (jax.random.uniform(keys[5], (2, 1, 8, 8)) > 0.5).astype(jnp.float32)
    ref3 = dice_loss_reference(logits3, tgt3, [1.0])
    loss3 = jax.block_until_ready(dice_loss_pallas(logits3, tgt3, [1.0]))
    assert jnp.allclose(loss3, ref3, rtol=2e-3, atol=1e-5), (loss3, ref3)

    print("KERNEL_OK")
</pallas_src>

<mosaic_0001>
module attributes {stable_mosaic.version = 11 : i64} {
  func.func @_dice_sums_kernel(%arg0: i32, %arg1: i32, %arg2: memref<1x4x2x128xf32, #tpu.memory_space<vmem>>, %arg3: memref<1x4x2x128xf32, #tpu.memory_space<vmem>>, %arg4: memref<1x4x128xf32, #tpu.memory_space<vmem>>, %arg5: memref<1x4x128xf32, #tpu.memory_space<vmem>>, %arg6: memref<1x4x128xf32, #tpu.memory_space<vmem>>) attributes {dimension_semantics = [#tpu.dimension_semantics<parallel>, #tpu.dimension_semantics<arbitrary>], iteration_bounds = array<i64: 2, 1>, scalar_prefetch = 0 : i64, scratch_operands = 0 : i64, tpu.core_type = #tpu.core_type<tc>, window_params = [{transform_indices = @transform_0, window_bounds = array<i64: 1, 4, 2, 128>}, {transform_indices = @transform_1, window_bounds = array<i64: 1, 4, 2, 128>}, {transform_indices = @transform_2, window_bounds = array<i64: 1, 4, 128>}, {transform_indices = @transform_3, window_bounds = array<i64: 1, 4, 128>}, {transform_indices = @transform_4, window_bounds = array<i64: 1, 4, 128>}]} {
    %c0_i32 = arith.constant 0 : i32
    %0 = arith.cmpi eq, %arg1, %c0_i32 : i32
    %1 = arith.extui %0 : i1 to i32
    %c0_i32_0 = arith.constant 0 : i32
    %2 = arith.cmpi ne, %1, %c0_i32_0 : i32
    scf.if %2 {
      %cst_30 = arith.constant 0.000000e+00 : f32
      %39 = vector.broadcast %cst_30 : f32 to vector<4x128xf32>
      %c0_31 = arith.constant 0 : index
      %c0_32 = arith.constant 0 : index
      %c0_33 = arith.constant 0 : index
      %40 = vector.load %arg4[%c0_31, %c0_32, %c0_33] : memref<1x4x128xf32, #tpu.memory_space<vmem>>, vector<1x4x128xf32>
      %41 = vector.shape_cast %40 : vector<1x4x128xf32> to vector<4x128xf32>
      %42 = vector.shape_cast %39 : vector<4x128xf32> to vector<1x4x128xf32>
      tpu.vector_store %arg4[%c0_31, %c0_32, %c0_33], %42 {strides = array<i32>} : memref<1x4x128xf32, #tpu.memory_space<vmem>>, vector<1x4x128xf32>,
      %cst_34 = arith.constant 0.000000e+00 : f32
      %43 = vector.broadcast %cst_34 : f32 to vector<4x128xf32>
      %c0_35 = arith.constant 0 : index
      %c0_36 = arith.constant 0 : index
      %c0_37 = arith.constant 0 : index
      %44 = vector.load %arg5[%c0_35, %c0_36, %c0_37] : memref<1x4x128xf32, #tpu.memory_space<vmem>>, vector<1x4x128xf32>
      %45 = vector.shape_cast %44 : vector<1x4x128xf32> to vector<4x128xf32>
      %46 = vector.shape_cast %43 : vector<4x128xf32> to vector<1x4x128xf32>
      tpu.vector_store %arg5[%c0_35, %c0_36, %c0_37], %46 {strides = array<i32>} : memref<1x4x128xf32, #tpu.memory_space<vmem>>, vector<1x4x128xf32>,
      %cst_38 = arith.constant 0.000000e+00 : f32
      %47 = vector.broadcast %cst_38 : f32 to vector<4x128xf32>
      %c0_39 = arith.constant 0 : index
      %c0_40 = arith.constant 0 : index
      %c0_41 = arith.constant 0 : index
      %48 = vector.load %arg6[%c0_39, %c0_40, %c0_41] : memref<1x4x128xf32, #tpu.memory_space<vmem>>, vector<1x4x128xf32>
      %49 = vector.shape_cast %48 : vector<1x4x128xf32> to vector<4x128xf32>
      %50 = vector.shape_cast %47 : vector<4x128xf32> to vector<1x4x128xf32>
      tpu.vector_store %arg6[%c0_39, %c0_40, %c0_41], %50 {strides = array<i32>} : memref<1x4x128xf32, #tpu.memory_space<vmem>>, vector<1x4x128xf32>,
    } else {
    }
    %c0 = arith.constant 0 : index
    %c0_1 = arith.constant 0 : index
    %c0_2 = arith.constant 0 : index
    %c0_3 = arith.constant 0 : index
    %3 = vector.load %arg2[%c0, %c0_1, %c0_2, %c0_3] : memref<1x4x2x128xf32, #tpu.memory_space<vmem>>, vector<1x4x2x128xf32>
    %4 = vector.shape_cast %3 : vector<1x4x2x128xf32> to vector<4x2x128xf32>
    %c0_4 = arith.constant 0 : index
    %c0_5 = arith.constant 0 : index
    %c0_6 = arith.constant 0 : index
    %c0_7 = arith.constant 0 : index
    %5 = vector.load %arg3[%c0_4, %c0_5, %c0_6, %c0_7] : memref<1x4x2x128xf32, #tpu.memory_space<vmem>>, vector<1x4x2x128xf32>
    %6 = vector.shape_cast %5 : vector<1x4x2x128xf32> to vector<4x2x128xf32>
    %cst = arith.constant dense<0xFF800000> : vector<2x128xf32>
    %7 = vector.multi_reduction <maximumf>, %4, %cst [0] : vector<4x2x128xf32> to vector<2x128xf32>
    %8 = vector.shape_cast %7 : vector<2x128xf32> to vector<1x2x128xf32>
    %9 = vector.broadcast %8 : vector<1x2x128xf32> to vector<4x2x128xf32>
    %10 = arith.subf %4, %9 : vector<4x2x128xf32>
    %11 = math.exp %10 : vector<4x2x128xf32>
    %cst_8 = arith.constant dense<0.000000e+00> : vector<2x128xf32>
    %12 = vector.multi_reduction <add>, %11, %cst_8 [0] : vector<4x2x128xf32> to vector<2x128xf32>
    %13 = vector.shape_cast %12 : vector<2x128xf32> to vector<1x2x128xf32>
    %14 = tpu.reciprocal %13 {approx = true} : vector<1x2x128xf32> -> vector<1x2x128xf32>
    %15 = vector.broadcast %14 : vector<1x2x128xf32> to vector<4x2x128xf32>
    %16 = arith.mulf %11, %15 : vector<4x2x128xf32>
    %c0_9 = arith.constant 0 : index
    %c0_10 = arith.constant 0 : index
    %c0_11 = arith.constant 0 : index
    %17 = vector.load %arg4[%c0_9, %c0_10, %c0_11] : memref<1x4x128xf32, #tpu.memory_space<vmem>>, vector<1x4x128xf32>
    %18 = vector.shape_cast %17 : vector<1x4x128xf32> to vector<4x128xf32>
    %19 = arith.mulf %16, %6 : vector<4x2x128xf32>
    %cst_12 = arith.constant dense<0.000000e+00> : vector<4x128xf32>
    %20 = vector.multi_reduction <add>, %19, %cst_12 [1] : vector<4x2x128xf32> to vector<4x128xf32>
    %21 = arith.addf %18, %20 : vector<4x128xf32>
    %c0_13 = arith.constant 0 : index
    %c0_14 = arith.constant 0 : index
    %c0_15 = arith.constant 0 : index
    %22 = vector.load %arg4[%c0_13, %c0_14, %c0_15] : memref<1x4x128xf32, #tpu.memory_space<vmem>>, vector<1x4x128xf32>
    %23 = vector.shape_cast %22 : vector<1x4x128xf32> to vector<4x128xf32>
    %24 = vector.shape_cast %21 : vector<4x128xf32> to vector<1x4x128xf32>
    tpu.vector_store %arg4[%c0_13, %c0_14, %c0_15], %24 {strides = array<i32>} : memref<1x4x128xf32, #tpu.memory_space<vmem>>, vector<1x4x128xf32>,
    %c0_16 = arith.constant 0 : index
    %c0_17 = arith.constant 0 : index
    %c0_18 = arith.constant 0 : index
    %25 = vector.load %arg5[%c0_16, %c0_17, %c0_18] : memref<1x4x128xf32, #tpu.memory_space<vmem>>, vector<1x4x128xf32>
    %26 = vector.shape_cast %25 : vector<1x4x128xf32> to vector<4x128xf32>
    %cst_19 = arith.constant dense<0.000000e+00> : vector<4x128xf32>
    %27 = vector.multi_reduction <add>, %16, %cst_19 [1] : vector<4x2x128xf32> to vector<4x128xf32>
    %28 = arith.addf %26, %27 : vector<4x128xf32>
    %c0_20 = arith.constant 0 : index
    %c0_21 = arith.constant 0 : index
    %c0_22 = arith.constant 0 : index
    %29 = vector.load %arg5[%c0_20, %c0_21, %c0_22] : memref<1x4x128xf32, #tpu.memory_space<vmem>>, vector<1x4x128xf32>
    %30 = vector.shape_cast %29 : vector<1x4x128xf32> to vector<4x128xf32>
    %31 = vector.shape_cast %28 : vector<4x128xf32> to vector<1x4x128xf32>
    tpu.vector_store %arg5[%c0_20, %c0_21, %c0_22], %31 {strides = array<i32>} : memref<1x4x128xf32, #tpu.memory_space<vmem>>, vector<1x4x128xf32>,
    %c0_23 = arith.constant 0 : index
    %c0_24 = arith.constant 0 : index
    %c0_25 = arith.constant 0 : index
    %32 = vector.load %arg6[%c0_23, %c0_24, %c0_25] : memref<1x4x128xf32, #tpu.memory_space<vmem>>, vector<1x4x128xf32>
    %33 = vector.shape_cast %32 : vector<1x4x128xf32> to vector<4x128xf32>
    %cst_26 = arith.constant dense<0.000000e+00> : vector<4x128xf32>
    %34 = vector.multi_reduction <add>, %6, %cst_26 [1] : vector<4x2x128xf32> to vector<4x128xf32>
    %35 = arith.addf %33, %34 : vector<4x128xf32>
    %c0_27 = arith.constant 0 : index
    %c0_28 = arith.constant 0 : index
    %c0_29 = arith.constant 0 : index
    %36 = vector.load %arg6[%c0_27, %c0_28, %c0_29] : memref<1x4x128xf32, #tpu.memory_space<vmem>>, vector<1x4x128xf32>
    %37 = vector.shape_cast %36 : vector<1x4x128xf32> to vector<4x128xf32>
    %38 = vector.shape_cast %35 : vector<4x128xf32> to vector<1x4x128xf32>
    tpu.vector_store %arg6[%c0_27, %c0_28, %c0_29], %38 {strides = array<i32>} : memref<1x4x128xf32, #tpu.memory_space<vmem>>, vector<1x4x128xf32>,
    return
  }
  func.func @transform_0(%arg0: i32, %arg1: i32) -> (i32, i32, i32, i32) {
    %c0_i32 = arith.constant 0 : i32
    %c0_i32_0 = arith.constant 0 : i32
    %c0_i32_1 = arith.constant 0 : i32
    return %arg0, %c0_i32, %arg1, %c0_i32_0 : i32, i32, i32, i32
  }
  func.func @transform_1(%arg0: i32, %arg1: i32) -> (i32, i32, i32, i32) {
    %c0_i32 = arith.constant 0 : i32
    %c0_i32_0 = arith.constant 0 : i32
    %c0_i32_1 = arith.constant 0 : i32
    return %arg0, %c0_i32, %arg1, %c0_i32_0 : i32, i32, i32, i32
  }
  func.func @transform_2(%arg0: i32, %arg1: i32) -> (i32, i32, i32) {
    %c0_i32 = arith.constant 0 : i32
    %c0_i32_0 = arith.constant 0 : i32
    %c0_i32_1 = arith.constant 0 : i32
    return %arg0, %c0_i32, %c0_i32_0 : i32, i32, i32
  }
  func.func @transform_3(%arg0: i32, %arg1: i32) -> (i32, i32, i32) {
    %c0_i32 = arith.constant 0 : i32
    %c0_i32_0 = arith.constant 0 : i32
    %c0_i32_1 = arith.constant 0 : i32
    return %arg0, %c0_i32, %c0_i32_0 : i32, i32, i32
  }
  func.func @transform_4(%arg0: i32, %arg1: i32) -> (i32, i32, i32) {
    %c0_i32 = arith.constant 0 : i32
    %c0_i32_0 = arith.constant 0 : i32
    %c0_i32_1 = arith.constant 0 : i32
    return %arg0, %c0_i32, %c0_i32_0 : i32, i32, i32
  }
}

</mosaic_0001>

<bundles_post_ra>
// kernel: tpu_custom_call.1
= control target key start
LH: loop header
LB: loop body
LE: loop exit
PB: predicated region body
PF: predicated region fallthrough
CT: control target
= control target key end

     0   :  { %s1410_s0 = inlined_call_operand.hbm [shape: f32[2,4,2,128], index: 0, kind: input, shape index: {}]   ;;  %s1411_s1 = inlined_call_operand.hbm [shape: f32[2,4,2,128], index: 1, kind: input, shape index: {}]   ;;  %s1412_s2 = inlined_call_operand.hbm [shape: f32[2,4,128], index: 2, kind: output, shape index: {0}]   ;;  %s1413_s3 = inlined_call_operand.hbm [shape: f32[2,4,128], index: 3, kind: output, shape index: {1}]   ;;  %s1414_s4 = inlined_call_operand.hbm [shape: f32[2,4,128], index: 4, kind: output, shape index: {2}]  }
   0x1   :  { %1419 = sst [smem:[#allocation15_spill]] %s1410_s0 }
   0x2   :  { %10 = vsyncpa [#allocation3], 0 }
   0x3   :  { %12 = vsyncpa [#allocation3 + $0x1], 0 }
   0x4   :  { %13 = vsyncpa [#allocation6], 0 }
   0x5   :  { %15 = vsyncpa [#allocation6 + $0x1], 0 }
   0x6   :  { %16 = vsyncpa [#allocation4], 0 }
   0x7   :  { %18 = vsyncpa [#allocation4 + $0x1], 0 }
   0x8   :  { %19 = vsyncpa [#allocation9], 0 }
   0x9   :  { %21 = vsyncpa [#allocation9 + $0x1], 0  ;;  %s1036_s15 = smov 0   ;;  %s1038_s16 = smov 0  }
   0xa   :  { %s1040_s17 = smov 0   ;;  %s1042_s18 = smov 0  }
   0xb   :  { %s1044_s19 = smov 0   ;;  %s1046_s20 = smov 0  }
   0xc LB: > { %s1067_s21 = sadd.s32 4294967295, %s1001_s20   ;;  %s1415_s22 = sadd.s32 4294967294, %s1001_s20   ;;  %s1001_s20 = sphi %s1046_s20, %s27_s20   ;;  %s997_s19 = sphi %s1044_s19, %s1438_s19   ;;  %s993_s18 = sphi %s1042_s18, %s1437_s18   ;;  %s989_s17 = sphi %s1040_s17, %s1436_s17   ;;  %s985_s16 = sphi %s1038_s16, %s1435_s16   ;;  %s981_s15 = sphi %s1036_s15, %s1434_s15  }
   0xd   : > { %s39_s23 = sadd.s32 1, %s997_s19  ;;  %s48_s24 = sadd.s32 1, %s989_s17 }
   0xe   : > { %p41_p0 = scmp.ge.s32.totalorder %s39_s23, 2  ;;  %p55_p1 = scmp.ne.s32.totalorder %s989_s17, %s985_s16 }
   0xf   : > { %p56_p2 = scmp.eq.s32.totalorder %s1001_s20, 0  ;;  %p61_p3 = scmp.ne.s32.totalorder %s985_s16, %s981_s15 }
  0x10   : > { %s1440_s23 = smov (%p41_p0, %s39_s23), 0  ;;  %p62_p5 = scmp.eq.s32.totalorder %s1067_s21, 0 }
  0x11   : > { %p1079_p4 = por %p56_p2, %p55_p1  ;;  %s43_s26 = ssub.s32 %s997_s19, %s1440_s23 }
  0x12   : > { %p113_p6 = scmp.eq.s32.totalorder %s1067_s21, 1  ;;  %p46_p7 = scmp.eq.s32.totalorder %s43_s26, 0 }
  0x13   : > { %p1087_p8 = por %p62_p5, %p61_p3  ;;  %p119_p10 = scmp.eq.s32.totalorder %s1415_s22, 1 }
  0x14   : > { %p1091_p9 = por %p113_p6, %p55_p1  ;;  %p732_p13 = scmp.lt.s32.totalorder %s1001_s20, 2 }
  0x15   : > { %s1421_s27 = scalar_select %p1087_p8, 1, 0 }
  0x16   : > { %s1422_s28 = scalar_select %p1091_p9, 1, 0 }
  0x17   : > { %s1098_s29 = scalar_select %p46_p7, %s989_s17, %s48_s24  }
  0x18   : > { %p1100_p11 = por %p119_p10, %p61_p3  ;;  %s1107_s5 = sand.u32 1, %s989_s17  }
  0x19   : > { %s683_s6 = sshll.u32 %s1107_s5, 3  ;;  %s703_s7 = sshll.u32 %s997_s19, 7 }
  0x1a   : > { %s1423_s30 = scalar_select %p1100_p11, 1, 0 }
  0x1b   : > { %s1424_s0 = sld [smem:[#allocation15_spill]]  ;;  %s195_s11 = scalar_lea.vmem [#allocation2], %s683_s6 }
  0x1c   : > { %s203_s12 = sshll.u32 %s195_s11, 4  ;;  %p1124_p0 = pnand %p732_p13, %p1079_p4  ;;  %s1120_s12 = int_to_ptr.vmem [resolvable:$true] %s203_s12 }
  0x1d   : > { %s192_s14 = scalar_lea.sflag [#allocation3], %s1107_s5 }
  0x1e   : > { %p797_p3 = pneg %p1124_p0 }
  0x21   : > { %s1116_s10 = scalar_lea.hbm %s1424_s0, %s703_s7  ;;  %s800_s25 = scalar_lea.hbm %s1424_s0, 256 }
  0x22   : > { %s795_s24 = scalar_lea.hbm %s1116_s10, 128  ;;  %p801_p4 = scmp.lt.u32.totalorder %s1116_s10, %s1424_s0 }
  0x23   : > { %p796_p2 = scmp.ne.s32.totalorder %s1116_s10, %s795_s24  ;;  %p802_p7 = scmp.lt.u32.totalorder %s800_s25, %s795_s24 }
  0x24   : > { %p804_p13 = scmp.lt.u32.totalorder %s795_s24, %s1116_s10 }
  0x25   : > { %p798_p5 = pnand %p797_p3, %p796_p2  ;;  %p803_p10 = por %p802_p7, %p801_p4 }
  0x27   : > { %p799_p6 = pneg %p798_p5  ;;  %p805_p12 = por %p804_p13, %p803_p10 }
  0x29   : > { %p806_p1 = pnand %p805_p12, %p799_p6 }
  0x2b   : > { %809 = shalt.err (!%p806_p1)
}
  0x2c   : > { %s810_s22 = scalar_lea.vmem %s1120_s12, 128  ;;  %s1003_s26 = smov [#allocation2]  }
  0x2d   : > { %p811_p2 = scmp.ne.s32.totalorder %s1120_s12, %s810_s22  ;;  %s815_s8 = sshll.u32 %s1003_s26, 4  ;;  %s816_s8 = int_to_ptr.vmem [resolvable:$false] %s815_s8 }
  0x2e   : > { %s817_s9 = scalar_lea.vmem %s816_s8, 256  ;;  %p818_p9 = scmp.lt.s32.totalorder %s1120_s12, %s816_s8 }
  0x2f   : > { %p813_p5 = pnand %p811_p2, %p797_p3  ;;  %p819_p4 = scmp.lt.s32.totalorder %s817_s9, %s810_s22 }
  0x31   : > { %p814_p11 = pneg %p813_p5  ;;  %p820_p7 = por %p819_p4, %p818_p9 }
  0x33   : > { %p821_p10 = pnand %p820_p7, %p814_p11 }
  0x35   : > { %824 = shalt.err (!%p821_p10)
}
  0x36   : > { %s1417_s24 = smov 32   ;;  %s1005_s25 = smov 2  }
  0x37   : > { %718 = dma.hbm_to_vmem [thread:$0]  (!%p1124_p0), %s1116_s10, 128, %s1120_s12, %s192_s14, %s1417_s24, %s1417_s24, %s1005_s25  }
  0x38   : > { %p233_p9 = scmp.lt.s32.totalorder %s1001_s20, 3  ;;  %s1166_s26 = scalar_lea.hbm %s1411_s1, %s703_s7 }
  0x39   : > { %p1426_p11 = scmp.ge.s32.totalorder %s1001_s20, 1  ;;  %s217_s9 = scalar_lea.vmem [#allocation5], %s683_s6 }
  0x3a   : > { %s225_s0 = sshll.u32 %s217_s9, 4  ;;  %s214_s10 = scalar_lea.sflag [#allocation6], %s1107_s5  ;;  %s1176_s0 = int_to_ptr.vmem [resolvable:$true] %s225_s0 }
  0x3b   : > { %p1170_p12 = pnand %p1426_p11, %p233_p9  ;;  %s825_s12 = scalar_lea.hbm %s1166_s26, 128 }
  0x3c   : > { %p826_p1 = scmp.ne.s32.totalorder %s1166_s26, %s825_s12  ;;  %s830_s22 = scalar_lea.hbm %s1411_s1, 256 }
  0x3d   : > { %p831_p2 = scmp.lt.u32.totalorder %s1166_s26, %s1411_s1  ;;  %p832_p5 = scmp.lt.u32.totalorder %s830_s22, %s825_s12 }
  0x3e   : > { %p828_p6 = pnand %p826_p1, %p797_p3  ;;  %p834_p7 = scmp.lt.u32.totalorder %s825_s12, %s1166_s26 }
  0x3f   : > { %p833_p4 = por %p832_p5, %p831_p2 }
  0x40   : > { %p829_p13 = pneg %p828_p6 }
  0x41   : > { %p835_p10 = por %p834_p7, %p833_p4 }
  0x43   : > { %p836_p9 = pnand %p835_p10, %p829_p13 }
  0x45   : > { %839 = shalt.err (!%p836_p9)
}
  0x46   : > { %s840_s6 = scalar_lea.vmem %s1176_s0, 128  ;;  %s1006_s9 = smov [#allocation5]  }
  0x47   : > { %p841_p11 = scmp.ne.s32.totalorder %s1176_s0, %s840_s6  ;;  %s845_s7 = sshll.u32 %s1006_s9, 4  ;;  %s846_s7 = int_to_ptr.vmem [resolvable:$false] %s845_s7 }
  0x48   : > { %s847_s24 = scalar_lea.vmem %s846_s7, 256  ;;  %p848_p8 = scmp.lt.s32.totalorder %s1176_s0, %s846_s7 }
  0x49   : > { %p843_p1 = pnand %p841_p11, %p797_p3  ;;  %p849_p2 = scmp.lt.s32.totalorder %s847_s24, %s840_s6 }
  0x4b   : > { %p844_p6 = pneg %p843_p1  ;;  %p850_p5 = por %p849_p2, %p848_p8 }
  0x4d   : > { %p851_p4 = pnand %p850_p5, %p844_p6 }
  0x4f   : > { %854 = shalt.err (!%p851_p4)
}
  0x50   : > { %s1428_s12 = smov 32   ;;  %237 = sbr.rel (%p1170_p12) target bundleno = 212 (0xd4), region = 28 }
  0x51   : > { %721 = dma.hbm_to_vmem [thread:$0]  (!%p1124_p0), %s1166_s26, 128, %s1176_s0, %s214_s10, %s1428_s12, %s1428_s12, %s1005_s25  }
  0x52   : > { %s1210_s14 = sand.u32 (!%p1170_p12), 1, %s985_s16   ;;  %p1429_p8 = scmp.ne.s32.totalorder (!%p1170_p12), %s1421_s27, 0 }
  0x53   : > { %s690_s22 = sshll.u32 (!%p1170_p12), %s1210_s14, 3  ;;  %s240_s11 = scalar_lea.sflag (!%p1170_p12), [#allocation3], %s1210_s14 }
  0x54   : > { %s243_s13 = scalar_lea.vmem (!%p1170_p12), [#allocation2], %s690_s22 }
  0x57   : > { %964 = dma.done.wait (%p1429_p8), %s240_s11, 128  }
  0x58   : > { %966 = vsyncadd (%p1429_p8), %s240_s11, 4294967168  ;;  %s249_s0 = scalar_lea.sflag [#allocation6], %s1210_s14  ;;  %s252_s5 = scalar_lea.vmem [#allocation5], %s690_s22 }
  0x59   : > { %968 = dma.done.wait (%p1429_p8), %s249_s0, 128  }
  0x5a   : > { %970 = vsyncadd (%p1429_p8), %s249_s0, 4294967168  ;;  %s692_s25 = sshll.u32 %s1210_s14, 2  ;;  %v1007_v0 = vmov 0.0   ;;  %vm307_vm0 = vcmask 1041408   ;;  %v299_v1 = vld [vmem:[%s243_s13] sm:$0x3] }
  0x5b   : > { %s1224_s26 = scalar_lea.vmem [#allocation8], %s692_s25  ;;  %s1227_s8 = scalar_lea.vmem [#allocation7], %s692_s25  ;;  %v300_v2 = vld [vmem:[%s243_s13 + $0x2] sm:$0x3]  ;;  %v301_v3 = vld [vmem:[%s243_s13 + $0x4] sm:$0x3] }
  0x5c   : > { %297 = vst [vmem:[%s1224_s26] sm:$0xf] %v1007_v0  ;;  %296 = vst [vmem:[%s1227_s8] sm:$0xf] %v1007_v0  ;;  %s1230_s10 = scalar_lea.vmem [#allocation10], %s692_s25  ;;  %v302_v4 = vld [vmem:[%s243_s13 + $0x6] sm:$0x3]  ;;  %v308_v5 = vsel %vm307_vm0, %v299_v1, -inf }
  0x5d   : > { %298 = vst [vmem:[%s1230_s10] sm:$0xf] %v1007_v0  ;;  %v309_v6 = vsel %vm307_vm0, %v300_v2, -inf  ;;  %v310_v7 = vsel %vm307_vm0, %v301_v3, -inf  ;;  %v311_v8 = vsel %vm307_vm0, %v302_v4, -inf  ;;  %v1237_v11 = vld [vmem:[%s252_s5] sm:$0x3] }
  0x5e   : > { %v312_v9 = vmax.f32 %v308_v5, %v309_v6  ;;  %v313_v10 = vmax.f32 %v310_v7, %v311_v8  ;;  %v1239_v12 = vld [vmem:[%s252_s5 + $0x2] sm:$0x3]  ;;  %v1241_v13 = vld [vmem:[%s252_s5 + $0x4] sm:$0x3]  ;;  %v425_v14 = vsel %vm307_vm0, %v1237_v11, 0.0  ;;  %vm376_vm1 = vcmask 1041409  }
  0x5f   : > { %v432_v15 = vsel %vm307_vm0, %v1239_v12, 0.0  ;;  %v1247_v17 = vld [vmem:[%s252_s5 + $0x6] sm:$0x3]  ;;  %v426_v18 = vrot.slane %v425_v14, 4  ;;  %v439_v20 = vsel %vm307_vm0, %v1241_v13, 0.0  ;;  %vm378_vm2 = vcmask 1042434  }
  0x60   : > { %v314_v16 = vmax.f32 %v312_v9, %v313_v10  ;;  %v433_v19 = vrot.slane %v432_v15, 4  ;;  %v440_v21 = vrot.slane %v439_v20, 4  ;;  %v446_v22 = vsel %vm307_vm0, %v1247_v17, 0.0  ;;  %s468_s27 = sand.u32 1, %s1067_s21   ;;  %s1278_s6 = sshll.u32 %s993_s18, 6 }
  0x61   : > { %v427_v27 = vadd.f32 %v426_v18, %v425_v14  ;;  %v447_v30 = vrot.slane %v446_v22, 4  ;;  %vm380_vm3 = vcmask 1043459   ;;  %s500_s9 = sshll.u32 %s1224_s26, 4  ;;  %s513_s7 = sshll.u32 %s1230_s10, 4  ;;  %s1290_s9 = int_to_ptr.vmem [resolvable:$true] %s500_s9  ;;  %s1292_s7 = int_to_ptr.vmem [resolvable:$true] %s513_s7 }
  0x62   : > { %v315_v23 = vsub.f32 %v299_v1, %v314_v16  ;;  %v316_v24 = vsub.f32 %v300_v2, %v314_v16  ;;  %v317_v25 = vsub.f32 %v301_v3, %v314_v16  ;;  %v318_v26 = vsub.f32 %v302_v4, %v314_v16  ;;  %s1288_s24 = scalar_lea.hbm %s1413_s3, %s1278_s6  ;;  %s1298_s11 = scalar_lea.hbm %s1414_s4, %s1278_s6 }
  0x63   : > { %v434_v28 = vadd.f32 %v433_v19, %v432_v15  ;;  %v441_v29 = vadd.f32 %v440_v21, %v439_v20  ;;  %v428_v35 = vrot.slane %v427_v27, 2  ;;  %v448_v38 = vadd.f32 %v447_v30, %v446_v22  ;;  %s487_s13 = sshll.u32 %s1227_s8, 4  ;;  %s1305_s0 = scalar_lea.sflag [#allocation9], %s468_s27  ;;  %s1360_s13 = int_to_ptr.vmem [resolvable:$true] %s487_s13 }
  0x64   : > { %v319_v31 = vmul.f32 1.442695, %v315_v23  ;;  %v321_v32 = vmul.f32 1.442695, %v316_v24  ;;  %v323_v33 = vmul.f32 1.442695, %v317_v25 }
  0x65   : > { %v325_v34 = vmul.f32 1.442695, %v318_v26  ;;  %v435_v36 = vrot.slane %v434_v28, 2  ;;  %v442_v37 = vrot.slane %v441_v29, 2  ;;  %v429_v39 = vadd.f32 %v428_v35, %v427_v27  ;;  %v424_v52 = vld [vmem:[%s1230_s10] sm:$0xf] }
  0x66   : > { %785 = vpow2.f32 %v319_v31  ;;  %v449_v42 = vrot.slane %v448_v38, 2  ;;  %s855_s5 = scalar_lea.vmem %s1290_s9, 64  ;;  %p1430_p3 = scmp.ne.s32.totalorder %s1422_s28, 0 }
  0x67   : > { %787 = vpow2.f32 %v321_v32  ;;  %v436_v40 = vadd.f32 %v435_v36, %v434_v28  ;;  %v443_v41 = vadd.f32 %v442_v37, %v441_v29  ;;  %v430_v43 = vrot.slane %v429_v39, 1  ;;  %p856_p0 = scmp.ne.s32.totalorder %s1290_s9, %s855_s5  ;;  %s1008_s25 = smov [#allocation8]  }
  0x68   : > { %789 = vpow2.f32 %v323_v33  ;;  %v450_v46 = vadd.f32 %v449_v42, %v448_v38 }
  0x69   : > { %791 = vpow2.f32 %v325_v34  ;;  %v437_v44 = vrot.slane %v436_v40, 1  ;;  %v444_v45 = vrot.slane %v443_v41, 1  ;;  %v431_v47 = vadd.f32 %v430_v43, %v429_v39  ;;  %p857_p12 = pnand %p856_p0, %p1430_p3 }
  0x6a   : > { %v451_v50 = vrot.slane %v450_v46, 1 }
  0x6b   : > { %v438_v48 = vadd.f32 %v437_v44, %v436_v40  ;;  %v445_v49 = vadd.f32 %v444_v45, %v443_v41  ;;  %p858_p13 = pneg %p857_p12 }
  0x6c   : > { %v452_v53 = vadd.f32 %v451_v50, %v450_v46 }
  0x6d   : > { %v457_v51 = vsel %vm376_vm1, %v438_v48, %v431_v47 }
  0x6e   : > { %v458_v54 = vsel %vm378_vm2, %v445_v49, %v457_v51 }
  0x6f   : > { %v459_v56 = vsel %vm380_vm3, %v452_v53, %v458_v54 }
  0x70   : > { %v786_v55 = vpop.eup %785  ;;  %v461_v59 = vadd.f32 %v459_v56, %v424_v52 }
  0x71   : > { %v788_v57 = vpop.eup %787  ;;  %v327_v58 = vsel %vm307_vm0, %v786_v55, 0.0 }
  0x72   : > { %v790_v60 = vpop.eup %789  ;;  %v328_v61 = vsel %vm307_vm0, %v788_v57, 0.0  ;;  %462 = vst [vmem:[%s1230_s10] sm:$0xf] %v461_v59  ;;  %s859_s10 = sshll.u32 %s1008_s25, 4  ;;  %s860_s10 = int_to_ptr.vmem [resolvable:$false] %s859_s10 }
  0x73   : > { %v792_v62 = vpop.eup %791  ;;  %v329_v63 = vadd.f32 %v328_v61, %v327_v58  ;;  %v330_v0 = vsel %vm307_vm0, %v790_v60, 0.0  ;;  %v385_v61 = vld [vmem:[%s1224_s26] sm:$0xf]  ;;  %s861_s18 = scalar_lea.vmem %s860_s10, 128  ;;  %p862_p7 = scmp.lt.s32.totalorder %s1290_s9, %s860_s10 }
  0x74   : > { %v332_v1 = vsel %vm307_vm0, %v792_v62, 0.0  ;;  %p863_p10 = scmp.lt.s32.totalorder %s861_s18, %s855_s5 }
  0x75   : > { %v331_v2 = vadd.f32 %v330_v0, %v329_v63 }
  0x76   : > { %p864_p9 = por %p863_p10, %p862_p7 }
  0x77   : > { %v333_v3 = vadd.f32 %v332_v1, %v331_v2 }
  0x78   : > { %p865_p11 = pnand %p864_p9, %p858_p13 }
  0x79   : > { %793 = vrcp.f32 %v333_v3 }
  0x83   : > { %v794_v4 = vpop.eup %793 }
  0x84   : > { %v335_v5 = vmul.f32 %v794_v4, %v786_v55  ;;  %v336_v6 = vmul.f32 %v794_v4, %v788_v57  ;;  %v337_v7 = vmul.f32 %v794_v4, %v790_v60  ;;  %v338_v8 = vmul.f32 %v794_v4, %v792_v62 }
  0x86   : > { %v386_v9 = vsel %vm307_vm0, %v335_v5, 0.0  ;;  %v393_v10 = vsel %vm307_vm0, %v336_v6, 0.0  ;;  %v400_v14 = vsel %vm307_vm0, %v337_v7, 0.0  ;;  %v407_v15 = vsel %vm307_vm0, %v338_v8, 0.0 }
  0x87   : > { %v387_v16 = vrot.slane %v386_v9, 4  ;;  %v394_v18 = vrot.slane %v393_v10, 4  ;;  %v401_v19 = vrot.slane %v400_v14, 4  ;;  %v408_v20 = vrot.slane %v407_v15, 4 }
  0x88   : > { %v340_v21 = vmul.f32 %v335_v5, %v1237_v11  ;;  %v341_v22 = vmul.f32 %v336_v6, %v1239_v12  ;;  %v342_v23 = vmul.f32 %v337_v7, %v1241_v13  ;;  %v343_v24 = vmul.f32 %v338_v8, %v1247_v17 }
  0x89   : > { %v388_v25 = vadd.f32 %v387_v16, %v386_v9  ;;  %v395_v26 = vadd.f32 %v394_v18, %v393_v10  ;;  %v402_v27 = vadd.f32 %v401_v19, %v400_v14  ;;  %v409_v28 = vadd.f32 %v408_v20, %v407_v15  ;;  %v339_v10 = vld [vmem:[%s1227_s8] sm:$0xf] }
  0x8a   : > { %v344_v29 = vsel %vm307_vm0, %v340_v21, 0.0  ;;  %v351_v30 = vsel %vm307_vm0, %v341_v22, 0.0  ;;  %v358_v31 = vsel %vm307_vm0, %v342_v23, 0.0  ;;  %v365_v32 = vsel %vm307_vm0, %v343_v24, 0.0 }
  0x8b   : > { %v389_v33 = vrot.slane %v388_v25, 2  ;;  %v396_v11 = vrot.slane %v395_v26, 2  ;;  %v403_v34 = vrot.slane %v402_v27, 2  ;;  %v410_v12 = vrot.slane %v409_v28, 2 }
  0x8c   : > { %v345_v35 = vrot.slane %v344_v29, 4  ;;  %v352_v13 = vrot.slane %v351_v30, 4  ;;  %v359_v36 = vrot.slane %v358_v31, 4  ;;  %v366_v17 = vrot.slane %v365_v32, 4 }
  0x8d   : > { %v390_v37 = vadd.f32 %v389_v33, %v388_v25  ;;  %v397_v38 = vadd.f32 %v396_v11, %v395_v26  ;;  %v404_v39 = vadd.f32 %v403_v34, %v402_v27  ;;  %v411_v40 = vadd.f32 %v410_v12, %v409_v28 }
  0x8e   : > { %v346_v41 = vadd.f32 %v345_v35, %v344_v29  ;;  %v353_v42 = vadd.f32 %v352_v13, %v351_v30  ;;  %v360_v43 = vadd.f32 %v359_v36, %v358_v31  ;;  %v367_v44 = vadd.f32 %v366_v17, %v365_v32 }
  0x8f   : > { %v391_v45 = vrot.slane %v390_v37, 1  ;;  %v398_v46 = vrot.slane %v397_v38, 1  ;;  %v405_v47 = vrot.slane %v404_v39, 1  ;;  %v412_v48 = vrot.slane %v411_v40, 1 }
  0x90   : > { %v347_v49 = vrot.slane %v346_v41, 2  ;;  %v354_v50 = vrot.slane %v353_v42, 2  ;;  %v361_v51 = vrot.slane %v360_v43, 2  ;;  %v368_v52 = vrot.slane %v367_v44, 2 }
  0x91   : > { %v392_v53 = vadd.f32 %v391_v45, %v390_v37  ;;  %v399_v54 = vadd.f32 %v398_v46, %v397_v38  ;;  %v406_v55 = vadd.f32 %v405_v47, %v404_v39  ;;  %v413_v56 = vadd.f32 %v412_v48, %v411_v40 }
  0x92   : > { %v348_v57 = vadd.f32 %v347_v49, %v346_v41  ;;  %v355_v58 = vadd.f32 %v354_v50, %v353_v42  ;;  %v362_v59 = vadd.f32 %v361_v51, %v360_v43  ;;  %v369_v60 = vadd.f32 %v368_v52, %v367_v44 }
  0x93   : > { %v418_v62 = vsel %vm376_vm1, %v399_v54, %v392_v53 }
  0x94   : > { %v419_v63 = vsel %vm378_vm2, %v406_v55, %v418_v62  ;;  %v349_v0 = vrot.slane %v348_v57, 1  ;;  %v356_v1 = vrot.slane %v355_v58, 1  ;;  %v363_v2 = vrot.slane %v362_v59, 1 }
  0x95   : > { %v420_v3 = vsel %vm380_vm3, %v413_v56, %v419_v63  ;;  %v370_v4 = vrot.slane %v369_v60, 1 }
  0x96   : > { %v422_v5 = vadd.f32 %v420_v3, %v385_v61  ;;  %v350_v6 = vadd.f32 %v349_v0, %v348_v57  ;;  %v357_v7 = vadd.f32 %v356_v1, %v355_v58  ;;  %v364_v8 = vadd.f32 %v363_v2, %v362_v59 }
  0x97   : > { %v371_v9 = vadd.f32 %v370_v4, %v369_v60 }
  0x98   : > { %423 = vst [vmem:[%s1224_s26] sm:$0xf] %v422_v5  ;;  %v377_v14 = vsel %vm376_vm1, %v357_v7, %v350_v6 }
  0x99   : > { %v379_v15 = vsel %vm378_vm2, %v364_v8, %v377_v14 }
  0x9a   : > { %868 = shalt.err (!%p865_p11)
}
  0x9b   : > { %s869_s26 = scalar_lea.hbm %s1288_s24, 64  ;;  %s873_s12 = scalar_lea.hbm %s1413_s3, 128 }
  0x9c   : > { %p870_p1 = scmp.ne.s32.totalorder %s1288_s24, %s869_s26  ;;  %p874_p5 = scmp.lt.u32.totalorder %s1288_s24, %s1413_s3 }
  0x9d   : > { %p875_p4 = scmp.lt.u32.totalorder %s873_s12, %s869_s26  ;;  %p877_p0 = scmp.lt.u32.totalorder %s869_s26, %s1288_s24 }
  0x9e   : > { %p871_p6 = pnand %p870_p1, %p1430_p3 }
  0x9f   : > { %p876_p8 = por %p875_p4, %p874_p5 }
  0xa0   : > { %p872_p2 = pneg %p871_p6 }
  0xa1   : > { %p878_p12 = por %p877_p0, %p876_p8 }
  0xa3   : > { %p879_p13 = pnand %p878_p12, %p872_p2 }
  0xa5   : > { %882 = shalt.err (!%p879_p13)
}
  0xa6   : > { %710 = dma.vmem_to_hbm [thread:$0]  (%p1430_p3), %s1290_s9, 64, %s1288_s24, %s1305_s0   ;;  %v381_v16 = vsel %vm380_vm3, %v371_v9, %v379_v15 }
  0xa7   : > { %s883_s5 = scalar_lea.vmem %s1292_s7, 64  ;;  %s1009_s10 = smov [#allocation10]  }
  0xa8   : > { %p884_p7 = scmp.ne.s32.totalorder %s1292_s7, %s883_s5  ;;  %s887_s18 = sshll.u32 %s1009_s10, 4  ;;  %s888_s18 = int_to_ptr.vmem [resolvable:$false] %s887_s18 }
  0xa9   : > { %s889_s26 = scalar_lea.vmem %s888_s18, 128  ;;  %p890_p11 = scmp.lt.s32.totalorder %s1292_s7, %s888_s18 }
  0xaa   : > { %p885_p10 = pnand %p884_p7, %p1430_p3  ;;  %p891_p1 = scmp.lt.s32.totalorder %s889_s26, %s883_s5 }
  0xac   : > { %p886_p9 = pneg %p885_p10  ;;  %p892_p6 = por %p891_p1, %p890_p11 }
  0xae   : > { %p893_p2 = pnand %p892_p6, %p886_p9 }
  0xb0   : > { %896 = shalt.err (!%p893_p2)
}
  0xb1   : > { %s897_s9 = scalar_lea.hbm %s1298_s11, 64  ;;  %s901_s21 = scalar_lea.hbm %s1414_s4, 128 }
  0xb2   : > { %p898_p5 = scmp.ne.s32.totalorder %s1298_s11, %s897_s9  ;;  %p902_p0 = scmp.lt.u32.totalorder %s1298_s11, %s1414_s4 }
  0xb3   : > { %p903_p12 = scmp.lt.u32.totalorder %s901_s21, %s897_s9  ;;  %p905_p7 = scmp.lt.u32.totalorder %s897_s9, %s1298_s11 }
  0xb4   : > { %p899_p4 = pnand %p898_p5, %p1430_p3 }
  0xb5   : > { %p904_p13 = por %p903_p12, %p902_p0 }
  0xb6   : > { %p900_p8 = pneg %p899_p4 }
  0xb7   : > { %p906_p10 = por %p905_p7, %p904_p13 }
  0xb9   : > { %p907_p9 = pnand %p906_p10, %p900_p8 }
  0xbb   : > { %910 = shalt.err (!%p907_p9)
}
  0xbc   : > { %711 = dma.vmem_to_hbm [thread:$0]  (%p1430_p3), %s1292_s7, 64, %s1298_s11, %s1305_s0   ;;  %v383_v18 = vadd.f32 %v381_v16, %v339_v10 }
  0xbd   : > { %s1356_s10 = scalar_lea.hbm %s1412_s2, %s1278_s6  ;;  %s464_s18 = scalar_lea.sflag [#allocation4], %s1210_s14 }
  0xbe   : > { %384 = vst [vmem:[%s1227_s8] sm:$0xf] %v383_v18  ;;  %s911_s26 = scalar_lea.vmem %s1360_s13, 64  ;;  %s1010_s7 = smov [#allocation7]  }
  0xbf   : > { %p912_p11 = scmp.ne.s32.totalorder %s1360_s13, %s911_s26  ;;  %s915_s11 = sshll.u32 %s1010_s7, 4  ;;  %s916_s11 = int_to_ptr.vmem [resolvable:$false] %s915_s11 }
  0xc0   : > { %s917_s0 = scalar_lea.vmem %s916_s11, 128  ;;  %p918_p2 = scmp.lt.s32.totalorder %s1360_s13, %s916_s11 }
  0xc1   : > { %p913_p1 = pnand %p912_p11, %p1430_p3  ;;  %p919_p5 = scmp.lt.s32.totalorder %s917_s0, %s911_s26 }
  0xc3   : > { %p914_p6 = pneg %p913_p1  ;;  %p920_p4 = por %p919_p5, %p918_p2 }
  0xc5   : > { %p921_p8 = pnand %p920_p4, %p914_p6 }
  0xc7   : > { %924 = shalt.err (!%p921_p8)
}
  0xc8   : > { %s925_s14 = scalar_lea.hbm %s1356_s10, 64  ;;  %s929_s9 = scalar_lea.hbm %s1412_s2, 128 }
  0xc9   : > { %p926_p0 = scmp.ne.s32.totalorder %s1356_s10, %s925_s14  ;;  %p930_p7 = scmp.lt.u32.totalorder %s1356_s10, %s1412_s2 }
  0xca   : > { %p931_p10 = scmp.lt.u32.totalorder %s929_s9, %s925_s14  ;;  %p933_p11 = scmp.lt.u32.totalorder %s925_s14, %s1356_s10 }
  0xcb   : > { %p927_p12 = pnand %p926_p0, %p1430_p3 }
  0xcc   : > { %p932_p9 = por %p931_p10, %p930_p7 }
  0xcd   : > { %p928_p13 = pneg %p927_p12 }
  0xce   : > { %p934_p1 = por %p933_p11, %p932_p9 }
  0xd0   : > { %p935_p6 = pnand %p934_p1, %p928_p13 }
  0xd2   : > { %938 = shalt.err (!%p935_p6)
}
  0xd3   : > { %709 = dma.vmem_to_hbm [thread:$0]  (%p1430_p3), %s1360_s13, 64, %s1356_s10, %s464_s18  }
  0xd4 PF: > { %s525_s21 = sand.u32 1, %s981_s15   ;;  %p1431_p2 = scmp.ne.s32.totalorder %s1423_s30, 0 }
  0xd5   : > { %p1432_p5 = scmp.ge.s32.totalorder %s1001_s20, 2  ;;  %s526_s12 = scalar_lea.sflag [#allocation4], %s525_s21 }
  0xd7   : > { %p723_p4 = pnand %p1432_p5, %p1431_p2 }
  0xd9   : > { %972 = dma.done.wait (!%p723_p4), %s526_s12, 64  }
  0xda   : > { %974 = vsyncadd (!%p723_p4), %s526_s12, 4294967232  ;;  %s1433_s22 = sadd.s32 4294967294, %s1001_s20  }
  0xdb   : > { %s534_s25 = sand.u32 1, %s1433_s22  }
  0xdc   : > { %s535_s5 = scalar_lea.sflag [#allocation9], %s534_s25 }
  0xdd   : > { %976 = dma.done.wait (!%p723_p4), %s535_s5, 128  }
  0xde   : > { %978 = vsyncadd (!%p723_p4), %s535_s5, 4294967168  ;;  %s27_s20 = sadd.s32 1, %s1001_s20   ;;  %s1434_s15 = smov %s985_s16 }
  0xdf   : > { %p24_p3 = scmp.ge.s32.totalorder %s27_s20, 4   ;;  %s1435_s16 = smov %s989_s17 }
  0xe0   : > { %s1436_s17 = smov %s1098_s29  ;;  %s1437_s18 = smov %s997_s19 }
  0xe1   : > { %s1438_s19 = smov %s1440_s23  ;;  %26 = sbr.rel (!%p24_p3) target bundleno = 12 (0xc), region = 122 }
  0xe8   :  { %549 = vsyncpa [#allocation3], 1 }
  0xe9   :  { %551 = vsyncpa [#allocation3 + $0x1], 1 }
  0xea   :  { %552 = vsyncpa [#allocation6], 1 }
  0xeb   :  { %554 = vsyncpa [#allocation6 + $0x1], 1 }
  0xec   :  { %555 = vsyncpa [#allocation4], 1 }
  0xed   :  { %557 = vsyncpa [#allocation4 + $0x1], 1 }
  0xee   :  { %558 = vsyncpa [#allocation9], 1 }
  0xef   :  { %560 = vsyncpa [#allocation9 + $0x1], 1 }

</bundles_post_ra>
